<compile_context>
chip_gen: v5e
topology: v5e:2x2
jax: 0.10.0
libtpu: 0.0.40
codegen_flags: <defaults>
</compile_context>

<pallas_src>
import functools

import numpy as np

import jax
import jax.numpy as jnp
from jax.experimental import pallas as pl
from jax.experimental.pallas import tpu as pltpu


def _head_kernel(*refs, normalize, clamp, quantized):
    """One grid step computes a [Bp, tn] tile of the logits.

    refs (in order):
      f_ref: [Bp, D]  raw f32 backbone features, resident across the grid
      w_ref: [D, tn]  bf16 (or int8) tile of the effective classifier weight
      s_ref: [1, tn]  per-class f32 dequant scale (only when quantized)
      o_ref: [Bp, tn] output logits tile
    """
    if quantized:
        f_ref, w_ref, s_ref, o_ref = refs
    else:
        f_ref, w_ref, o_ref = refs
        s_ref = None

    f = f_ref[...].astype(jnp.float32)
    if normalize:
        # F.normalize(x, p=2, dim=1): x / max(||x||_2, eps), eps = 1e-12.
        # Tiny [Bp, 1] reduction + divide; hidden under the weight DMA.
        norm = jnp.sqrt(jnp.sum(f * f, axis=1, keepdims=True))
        f = f / jnp.maximum(norm, 1e-12)
    f_bf16 = f.astype(jnp.bfloat16)

    w = w_ref[...]
    if quantized:
        w = w.astype(jnp.bfloat16)          # int8 -> bf16 dequant on the VPU

    logits = jnp.dot(f_bf16, w, preferred_element_type=jnp.float32)  # MXU, f32 acc
    if quantized:
        logits = logits * s_ref[...]        # per-class scale, broadcast over rows
    if clamp:
        logits = jnp.clip(logits, -1.0, 1.0)
    o_ref[...] = logits.astype(o_ref.dtype)


def prepare_head_weight(v, *, quantize_int8=False, num_tiles=4):
    """One-time parameter prep (do NOT call per forward pass).

    v: [N, D] raw nn.Linear weight.

    nn.utils.weight_norm(..., dim=1): g has shape [1, D] and the norm is taken
    over dim 0 (per input-feature column); g is initialized to that norm. The
    PyTorch forward's `weight_g.copy_ = torch.ones_like(...)` is a plain
    attribute assignment (a no-op), so g keeps its init value and the effective
    weight equals v numerically. We keep the full formula anyway.

    Returns (w_prepared [D, Np], scale [1, Np] or None) with Np = num_tiles * tn,
    tn = round_up(ceil(N / num_tiles), 128). Keep num_tiles even for v7x.
    """
    N, D = v.shape
    v = v.astype(jnp.float32)
    col_norm = jnp.sqrt(jnp.sum(v * v, axis=0, keepdims=True))     # [1, D]
    g = col_norm                                                   # init value of weight_g
    w_eff = g * v / jnp.maximum(col_norm, 1e-12)                   # == v numerically
    w_t = jnp.transpose(w_eff)                                     # [D, N]

    tn = pl.cdiv(pl.cdiv(N, num_tiles), 128) * 128
    Np = tn * num_tiles
    pad_n = Np - N

    if quantize_int8:
        amax = jnp.max(jnp.abs(w_t), axis=0, keepdims=True)        # [1, N] per class
        scale = jnp.maximum(amax, 1e-12) / 127.0
        w_q = jnp.clip(jnp.round(w_t / scale), -127, 127).astype(jnp.int8)
        if pad_n:
            w_q = jnp.pad(w_q, ((0, 0), (0, pad_n)))
            scale = jnp.pad(scale, ((0, 0), (0, pad_n)))
        return w_q, scale.astype(jnp.float32)

    w_b = w_t.astype(jnp.bfloat16)
    if pad_n:
        w_b = jnp.pad(w_b, ((0, 0), (0, pad_n)))
    return w_b, None


def face_classifier_head(features, w, scale=None, *, num_classes,
                         normalize_embeddings=True, num_tiles=4,
                         out_dtype=jnp.float32):
    """features: [B, 512] f32, w: prepared [D, Np] (bf16 or int8), scale: [1, Np]
    f32 or None. Returns logits [B, num_classes] in out_dtype.

    jit-compatible with static_argnames=("num_classes", "normalize_embeddings",
    "num_tiles"). In a real model this sits inside the backbone's jit.
    """
    B, D = features.shape
    Dw, Np = w.shape
    assert D == Dw, (D, Dw)
    assert Np % num_tiles == 0, (Np, num_tiles)
    tn = Np // num_tiles
    assert tn % 128 == 0 and D % 128 == 0, (tn, D)
    quantized = scale is not None

    # Pad B to a multiple of 8 so output stores are sublane-dense (tiny pad).
    Bp = pl.cdiv(B, 8) * 8
    f = features.astype(jnp.float32)
    if Bp != B:
        f = jnp.pad(f, ((0, Bp - B), (0, 0)))

    w_bytes = w.size * w.dtype.itemsize
    s_bytes = scale.size * 4 if quantized else 0
    cost = pl.CostEstimate(
        flops=2 * Bp * D * Np,
        transcendentals=Bp * num_tiles if normalize_embeddings else 0,
        bytes_accessed=w_bytes + s_bytes + Bp * D * 4
                       + Bp * Np * np.dtype(out_dtype).itemsize,
    )

    in_specs = [
        pl.BlockSpec((Bp, D), lambda j: (0, 0)),       # features: resident
        pl.BlockSpec((D, tn), lambda j: (0, j)),       # weight: streamed
    ]
    args = [f, w]
    if quantized:
        in_specs.append(pl.BlockSpec((1, tn), lambda j: (0, j)))   # per-class scales
        args.append(scale)

    kernel = functools.partial(_head_kernel, normalize=normalize_embeddings,
                               clamp=normalize_embeddings, quantized=quantized)
    out = pl.pallas_call(
        kernel,
        out_shape=jax.ShapeDtypeStruct((Bp, Np), out_dtype),
        grid_spec=pltpu.PrefetchScalarGridSpec(
            num_scalar_prefetch=0,
            grid=(num_tiles,),
            in_specs=in_specs,
            out_specs=pl.BlockSpec((Bp, tn), lambda j: (0, j)),
        ),
        compiler_params=pltpu.CompilerParams(
            dimension_semantics=("parallel",)),
        cost_estimate=cost,
    )(*args)

    return out[:B, :num_classes]


if __name__ == "__main__":
    key = jax.random.PRNGKey(0)
    k_feat, k_w = jax.random.split(key)

    B, D = 2, 512     # backbone feature dim is fixed at 512 by the module
    N = 1000          # small test size, not a multiple of 128 (pads to 1024)

    # Stand-in for ResNet50(x) output (backbone not defined in provided source).
    backbone_features = jax.random.normal(k_feat, (B, D), jnp.float32)

    # nn.Linear(512, N) weight init: U(-1/sqrt(D), 1/sqrt(D)), shape [N, D].
    bound = 1.0 / jnp.sqrt(jnp.float32(D))
    v = jax.random.uniform(k_w, (N, D), jnp.float32, minval=-bound, maxval=bound)

    head_fn = jax.jit(
        face_classifier_head,
        static_argnames=("num_classes", "normalize_embeddings", "num_tiles"))

    # Pure-JAX references.
    fn = backbone_features / jnp.maximum(
        jnp.sqrt(jnp.sum(backbone_features ** 2, axis=1, keepdims=True)), 1e-12)
    w_eff_t = jnp.transpose(v)            # weight_norm with g at its init value == v
    ref_f32 = jnp.clip(fn @ w_eff_t, -1.0, 1.0)
    fn_b = fn.astype(jnp.bfloat16).astype(jnp.float32)
    w_b_ref = w_eff_t.astype(jnp.bfloat16).astype(jnp.float32)
    ref_bf16 = jnp.clip(fn_b @ w_b_ref, -1.0, 1.0)

    # --- default bf16 weight-streaming path (all TPU generations) ---
    w_bf16, _ = prepare_head_weight(v, quantize_int8=False)       # one-time prep
    logits = head_fn(backbone_features, w_bf16, None,
                     num_classes=N, normalize_embeddings=True)
    jax.block_until_ready(logits)
    assert logits.shape == (B, N)
    err_b = float(jnp.max(jnp.abs(logits - ref_bf16)))
    assert jnp.allclose(logits, ref_bf16, atol=2e-3), err_b
    err_f = float(jnp.max(jnp.abs(logits - ref_f32)))
    assert jnp.allclose(logits, ref_f32, atol=2e-2), err_f

    # --- int8 weight-streaming path (halves weight HBM traffic; v5e/v6e) ---
    w_i8, s_i8 = prepare_head_weight(v, quantize_int8=True)       # one-time prep
    logits_i8 = head_fn(backbone_features, w_i8, s_i8,
                        num_classes=N, normalize_embeddings=True)
    jax.block_until_ready(logits_i8)
    err_q = float(jnp.max(jnp.abs(logits_i8 - ref_f32)))
    assert jnp.allclose(logits_i8, ref_f32, atol=2e-2), err_q

    # --- normalize_embeddings=False path (no normalize, no clamp) ---
    logits_nn = head_fn(backbone_features, w_bf16, None,
                        num_classes=N, normalize_embeddings=False)
    jax.block_until_ready(logits_nn)
    ref_nn = backbone_features @ w_eff_t
    err_n = float(jnp.max(jnp.abs(logits_nn - ref_nn)))
    assert jnp.allclose(logits_nn, ref_nn, atol=5e-2), err_n

    print("KERNEL_OK")
</pallas_src>

<mosaic_0001>
module attributes {stable_mosaic.version = 11 : i64} {
  func.func @_head_kernel(%arg0: i32, %arg1: memref<8x512xf32, #tpu.memory_space<vmem>>, %arg2: memref<512x256xbf16, #tpu.memory_space<vmem>>, %arg3: memref<8x256xf32, #tpu.memory_space<vmem>>) attributes {dimension_semantics = [#tpu.dimension_semantics<parallel>], iteration_bounds = array<i64: 4>, scalar_prefetch = 0 : i64, scratch_operands = 0 : i64, tpu.core_type = #tpu.core_type<tc>, window_params = [{pipeline_mode = #tpu.pipeline_mode<synchronous>, transform_indices = @transform_0, window_bounds = array<i64: 8, 512>}, {transform_indices = @transform_1, window_bounds = array<i64: 512, 256>}, {transform_indices = @transform_2, window_bounds = array<i64: 8, 256>}]} {
    %c0 = arith.constant 0 : index
    %c0_0 = arith.constant 0 : index
    %0 = vector.load %arg1[%c0, %c0_0] : memref<8x512xf32, #tpu.memory_space<vmem>>, vector<8x512xf32>
    %1 = arith.mulf %0, %0 : vector<8x512xf32>
    %cst = arith.constant dense<0.000000e+00> : vector<8xf32>
    %2 = vector.multi_reduction <add>, %1, %cst [1] : vector<8x512xf32> to vector<8xf32>
    %3 = vector.shape_cast %2 : vector<8xf32> to vector<8x1xf32>
    %4 = math.sqrt %3 : vector<8x1xf32>
    %cst_1 = arith.constant 9.99999996E-13 : f32
    %5 = vector.broadcast %cst_1 : f32 to vector<8x1xf32>
    %6 = arith.maximumf %4, %5 : vector<8x1xf32>
    %7 = vector.broadcast %6 : vector<8x1xf32> to vector<8x512xf32>
    %8 = arith.divf %0, %7 : vector<8x512xf32>
    %9 = arith.truncf %8 : vector<8x512xf32> to vector<8x512xbf16>
    %c0_2 = arith.constant 0 : index
    %c0_3 = arith.constant 0 : index
    %10 = vector.load %arg2[%c0_2, %c0_3] : memref<512x256xbf16, #tpu.memory_space<vmem>>, vector<512x256xbf16>
    %cst_4 = arith.constant dense<0.000000e+00> : vector<8x256xf32>
    %11 = tpu.matmul %9, %10, %cst_4 {dimension_numbers = #tpu.dot_dimension_numbers<[1], [0], [0], [1], [0, 0, 1, 1], [], []>} : vector<8x512xbf16>, vector<512x256xbf16>, vector<8x256xf32> -> vector<8x256xf32>
    %cst_5 = arith.constant -1.000000e+00 : f32
    %cst_6 = arith.constant 1.000000e+00 : f32
    %12 = vector.broadcast %cst_5 : f32 to vector<8x256xf32>
    %13 = arith.maximumf %12, %11 : vector<8x256xf32>
    %14 = vector.broadcast %cst_6 : f32 to vector<8x256xf32>
    %15 = arith.minimumf %14, %13 : vector<8x256xf32>
    %c0_7 = arith.constant 0 : index
    %c0_8 = arith.constant 0 : index
    %16 = vector.load %arg3[%c0_7, %c0_8] : memref<8x256xf32, #tpu.memory_space<vmem>>, vector<8x256xf32>
    tpu.vector_store %arg3[%c0_7, %c0_8], %15 {strides = array<i32>} : memref<8x256xf32, #tpu.memory_space<vmem>>, vector<8x256xf32>,
    return
  }
  func.func @transform_0(%arg0: i32) -> (i32, i32) {
    %c0_i32 = arith.constant 0 : i32
    %c0_i32_0 = arith.constant 0 : i32
    %c0_i32_1 = arith.constant 0 : i32
    return %c0_i32, %c0_i32_0 : i32, i32
  }
  func.func @transform_1(%arg0: i32) -> (i32, i32) {
    %c0_i32 = arith.constant 0 : i32
    %c0_i32_0 = arith.constant 0 : i32
    return %c0_i32, %arg0 : i32, i32
  }
  func.func @transform_2(%arg0: i32) -> (i32, i32) {
    %c0_i32 = arith.constant 0 : i32
    %c0_i32_0 = arith.constant 0 : i32
    return %c0_i32, %arg0 : i32, i32
  }
}

</mosaic_0001>

<bundles_post_ra>
// kernel: face_classifier_head.1
= control target key start
LH: loop header
LB: loop body
LE: loop exit
PB: predicated region body
PF: predicated region fallthrough
CT: control target
= control target key end

     0   :  { %7 = vsyncpa [#allocation3], 0  ;;  %s1507_s0 = inlined_call_operand.vmem [shape: f32[8,512], index: 0, kind: input, shape index: {}]   ;;  %s1508_s1 = inlined_call_operand.hbm [shape: bf16[512,1024], index: 1, kind: input, shape index: {}]   ;;  %s1509_s2 = inlined_call_operand.vmem [shape: f32[8,1024], index: 2, kind: output, shape index: {}]  }
   0x1   :  { %9 = vsyncpa [#allocation3 + $0x1], 0  ;;  %s1243_s9 = smov 0   ;;  %s1245_s10 = smov 0  }
   0x2   :  { %s1247_s11 = smov 0   ;;  %s1249_s12 = smov 0  }
   0x3 LB: > { %s777_s13 = sadd.s32 4294967295, %s1223_s12   ;;  %s1263_s14 = sadd.s32 1, %s1223_s12   ;;  %s1223_s12 = sphi %s1249_s12, %s1516_s12   ;;  %s1219_s11 = sphi %s1247_s11, %s1515_s11   ;;  %s1215_s10 = sphi %s1245_s10, %s1514_s10   ;;  %s1211_s9 = sphi %s1243_s9, %s1513_s9  }
   0x4   : > { %s40_s15 = ssub.s32 %s1223_s12, %s1263_s14  ;;  %s43_s16 = sadd.s32 1, %s1219_s11 }
   0x5   : > { %p41_p0 = scmp.eq.s32.totalorder %s40_s15, 0  ;;  %p50_p1 = scmp.ne.s32.totalorder %s1219_s11, %s1215_s10 }
   0x6   : > { %p51_p2 = scmp.eq.s32.totalorder %s1223_s12, 0  ;;  %p56_p3 = scmp.ne.s32.totalorder %s1215_s10, %s1211_s9 }
   0x7   : > { %s1273_s17 = scalar_select %p41_p0, %s1219_s11, %s43_s16  }
   0x8   : > { %p1275_p4 = por %p51_p2, %p50_p1  ;;  %p57_p5 = scmp.eq.s32.totalorder %s777_s13, 0 }
   0x9   : > { %p1119_p6 = scmp.lt.s32.totalorder %s1223_s12, 4  ;;  %s109_s20 = sand.u32 1, %s1219_s11  }
   0xa   : > { %p1282_p7 = por %p57_p5, %p56_p3  ;;  %s781_s21 = sshll.u32 %s109_s20, 9 }
   0xb   : > { %s1048_s22 = sshll.u32 %s1223_s12, 3  ;;  %s113_s26 = scalar_lea.vmem [#allocation2], %s781_s21 }
   0xc   : > { %s118_s25 = scalar_lea.hbm %s1508_s1, %s1048_s22  ;;  %s121_s27 = sshll.u32 %s113_s26, 4  ;;  %s122_s27 = int_to_ptr.vmem [resolvable:$true] %s121_s27 }
   0xd   : > { %s119_s28 = sshll.u32 %s118_s25, 4  ;;  %p1293_p8 = pnand %p1119_p6, %p1275_p4  ;;  %s120_s28 = int_to_ptr.hbm [resolvable:$true] %s119_s28 }
   0xe   : > { %s110_s30 = scalar_lea.sflag [#allocation3], %s109_s20  ;;  %s1159_s3 = sshra.s32 %s120_s28, 4  ;;  %s1160_s3 = int_to_ptr.hbm [resolvable:$true] %s1159_s3 }
   0xf   : > { %s1161_s4 = scalar_lea.hbm %s1160_s3, 512  ;;  %p1163_p10 = pneg %p1293_p8 }
  0x10   : > { %p1162_p9 = scmp.ne.s32.totalorder %s1160_s3, %s1161_s4  ;;  %s1166_s7 = scalar_lea.hbm %s1508_s1, 2048 }
  0x11   : > { %p1167_p13 = scmp.lt.s32.totalorder %s1160_s3, %s1508_s1  ;;  %p1168_p0 = scmp.lt.s32.totalorder %s1166_s7, %s1161_s4 }
  0x12   : > { %p1164_p11 = pnand %p1163_p10, %p1162_p9 }
  0x13   : > { %p1169_p1 = por %p1168_p0, %p1167_p13 }
  0x14   : > { %p1165_p12 = pneg %p1164_p11 }
  0x16   : > { %p1170_p2 = pnand %p1169_p1, %p1165_p12 }
  0x18   : > { %1173 = shalt.err (!%p1170_p2)
}
  0x19   : > { %s1225_s15 = smov 512   ;;  %s1226_s16 = smov 128  }
  0x1a   : > { %s1227_s18 = smov 8   ;;  %p784_p3 = scmp.ge.s32.totalorder %s1223_s12, 1 }
  0x1b   : > { %1118 = dma.hbm_to_vmem [thread:$0]  (!%p1293_p8), %s120_s28, 8192, %s122_s27, %s110_s30, %s1225_s15, %s1226_s16, %s1227_s18  }
  0x1c   : > { %p129_p4 = scmp.lt.s32.totalorder %s1223_s12, 5 }
  0x1e   : > { %p130_p5 = pnand %p784_p3, %p129_p4 }
  0x1f   : > { %s135_s20 = sand.u32 (!%p130_p5), 1, %s1215_s10  }
  0x20   : > { %133 = sbr.rel (%p130_p5) target bundleno = 364 (0x16c), region = 28  ;;  %s785_s21 = sshll.u32 (!%p130_p5), %s135_s20, 9 }
  0x21   : > { %s136_s22 = scalar_lea.sflag (!%p130_p5), [#allocation3], %s135_s20  ;;  %s1310_s23 = scalar_lea.vmem (!%p130_p5), [#allocation2], %s785_s21 }
  0x25   : > { %1206 = dma.done.wait (%p1282_p7), %s136_s22, 8192  }
  0x26   : > { %1208 = vsyncadd (%p1282_p7), %s136_s22, 4294959104  ;;  %v1319_v0 = vld [vmem:[%s1507_s0] sm:$0xff]  ;;  %v1324_v1 = vld [vmem:[%s1507_s0 + $0x8] sm:$0xff]  ;;  %s786_s3 = sshll.u32 %s777_s13, 1 }
  0x27   : > { %v1329_v2 = vld [vmem:[%s1507_s0 + $0x10] sm:$0xff]  ;;  %v1334_v3 = vld [vmem:[%s1507_s0 + $0x18] sm:$0xff]  ;;  %v172_v4 = vmul.f32 %v1319_v0, %v1319_v0  ;;  %v173_v5 = vmul.f32 %v1324_v1, %v1324_v1  ;;  %v838_v23 = vld [vmem:[%s1310_s23 + $0x60] sm:$0xf]  ;;  %p163_p6 = scmp.lt.s32.totalorder %s786_s3, 7 }
  0x28   : > { %v174_v6 = vmul.f32 %v1329_v2, %v1329_v2  ;;  %v175_v7 = vmul.f32 %v1334_v3, %v1334_v3  ;;  %v846_v11 = vld [vmem:[%s1310_s23 + $0x70] sm:$0xf]  ;;  %v1064_v12 = vld [vmem:[%s1310_s23 + $0x74] sm:$0xf0]  ;;  %v1062_v24 = vld [vmem:[%s1310_s23 + $0x64] sm:$0xf0] }
  0x29   : > { %v176_v8 = vadd.f32 %v173_v5, %v172_v4  ;;  %v910_v13 = vld [vmem:[%s1310_s23 + $0xf0] sm:$0xf]  ;;  %v847_v14 = vor.u32 %v1064_v12, %v846_v11  ;;  %v1080_v15 = vld [vmem:[%s1310_s23 + $0xf4] sm:$0xf0]  ;;  %v902_v25 = vld [vmem:[%s1310_s23 + $0xe0] sm:$0xf]  ;;  %v839_v26 = vor.u32 %v1062_v24, %v838_v23 }
  0x2a   : > { %v974_v16 = vld [vmem:[%s1310_s23 + $0x170] sm:$0xf]  ;;  %v1096_v17 = vld [vmem:[%s1310_s23 + $0x174] sm:$0xf0]  ;;  %v911_v18 = vor.u32 %v1080_v15, %v910_v13  ;;  %v1078_v27 = vld [vmem:[%s1310_s23 + $0xe4] sm:$0xf0] }
  0x2b   : > { %v177_v9 = vadd.f32 %v176_v8, %v174_v6  ;;  %v975_v19 = vor.u32 %v1096_v17, %v974_v16  ;;  %v1038_v20 = vld [vmem:[%s1310_s23 + $0x1f0] sm:$0xf]  ;;  %v1112_v21 = vld [vmem:[%s1310_s23 + $0x1f4] sm:$0xf0]  ;;  %600 = vmatpush.bf16.msra.mxu0 %v847_v14  ;;  %v966_v28 = vld [vmem:[%s1310_s23 + $0x160] sm:$0xf]  ;;  %v903_v30 = vor.u32 %v1078_v27, %v902_v25 }
  0x2c   : > { %v1039_v22 = vor.u32 %v1112_v21, %v1038_v20  ;;  %613 = vmatpush.bf16.msra.mxu1 %v911_v18  ;;  %v1094_v29 = vld [vmem:[%s1310_s23 + $0x164] sm:$0xf0]  ;;  %v1030_v32 = vld [vmem:[%s1310_s23 + $0x1e0] sm:$0xf]  ;;  %v830_v35 = vld [vmem:[%s1310_s23 + $0x50] sm:$0xf] }
  0x2d   : > { %v178_v10 = vadd.f32 %v177_v9, %v175_v7  ;;  %626 = vmatpush.bf16.msra.mxu2 %v975_v19  ;;  %v967_v31 = vor.u32 %v1094_v29, %v966_v28  ;;  %v1110_v33 = vld [vmem:[%s1310_s23 + $0x1e4] sm:$0xf0]  ;;  %v1060_v36 = vld [vmem:[%s1310_s23 + $0x54] sm:$0xf0]  ;;  %v894_v37 = vld [vmem:[%s1310_s23 + $0xd0] sm:$0xf] }
  0x2e   : > { %639 = vmatpush.bf16.msra.mxu3 %v1039_v22  ;;  %v1031_v34 = vor.u32 %v1110_v33, %v1030_v32  ;;  %v831_v38 = vor.u32 %v1060_v36, %v830_v35  ;;  %v1076_v39 = vld [vmem:[%s1310_s23 + $0xd4] sm:$0xf0]  ;;  %v958_v40 = vld [vmem:[%s1310_s23 + $0x150] sm:$0xf]  ;;  %v822_v47 = vld [vmem:[%s1310_s23 + $0x40] sm:$0xf] }
  0x2f   : > { %179 = vadd.xlane.f32.xlu0 %v178_v10  ;;  %601 = vmatpush.bf16.msra.mxu0 %v839_v26  ;;  %v1092_v41 = vld [vmem:[%s1310_s23 + $0x154] sm:$0xf0]  ;;  %v895_v42 = vor.u32 %v1076_v39, %v894_v37  ;;  %v1022_v44 = vld [vmem:[%s1310_s23 + $0x1d0] sm:$0xf]  ;;  %v1058_v48 = vld [vmem:[%s1310_s23 + $0x44] sm:$0xf0] }
  0x30   : > { %614 = vmatpush.bf16.msra.mxu1 %v903_v30  ;;  %v959_v43 = vor.u32 %v1092_v41, %v958_v40  ;;  %v1108_v45 = vld [vmem:[%s1310_s23 + $0x1d4] sm:$0xf0]  ;;  %v886_v49 = vld [vmem:[%s1310_s23 + $0xc0] sm:$0xf]  ;;  %v823_v50 = vor.u32 %v1058_v48, %v822_v47  ;;  %v1074_v51 = vld [vmem:[%s1310_s23 + $0xc4] sm:$0xf0] }
  0x31   : > { %627 = vmatpush.bf16.msra.mxu2 %v967_v31  ;;  %v1023_v46 = vor.u32 %v1108_v45, %v1022_v44  ;;  %v950_v52 = vld [vmem:[%s1310_s23 + $0x140] sm:$0xf]  ;;  %v1090_v53 = vld [vmem:[%s1310_s23 + $0x144] sm:$0xf0]  ;;  %v887_v54 = vor.u32 %v1074_v51, %v886_v49  ;;  %v814_v59 = vld [vmem:[%s1310_s23 + $0x30] sm:$0xf] }
  0x32   : > { %640 = vmatpush.bf16.msra.mxu3 %v1031_v34  ;;  %v951_v55 = vor.u32 %v1090_v53, %v950_v52  ;;  %v1014_v56 = vld [vmem:[%s1310_s23 + $0x1c0] sm:$0xf]  ;;  %v1106_v57 = vld [vmem:[%s1310_s23 + $0x1c4] sm:$0xf0]  ;;  %v1056_v60 = vld [vmem:[%s1310_s23 + $0x34] sm:$0xf0] }
  0x33   : > { %602 = vmatpush.bf16.msra.mxu0 %v831_v38  ;;  %v1015_v58 = vor.u32 %v1106_v57, %v1014_v56  ;;  %v878_v61 = vld [vmem:[%s1310_s23 + $0xb0] sm:$0xf]  ;;  %v815_v62 = vor.u32 %v1056_v60, %v814_v59  ;;  %v1072_v63 = vld [vmem:[%s1310_s23 + $0xb4] sm:$0xf0]  ;;  %v806_v11 = vld [vmem:[%s1310_s23 + $0x20] sm:$0xf] }
  0x34   : > { %615 = vmatpush.bf16.msra.mxu1 %v895_v42  ;;  %v942_v4 = vld [vmem:[%s1310_s23 + $0x130] sm:$0xf]  ;;  %v1088_v5 = vld [vmem:[%s1310_s23 + $0x134] sm:$0xf0]  ;;  %v879_v6 = vor.u32 %v1072_v63, %v878_v61  ;;  %v1054_v12 = vld [vmem:[%s1310_s23 + $0x24] sm:$0xf0] }
  0x35   : > { %628 = vmatpush.bf16.msra.mxu2 %v959_v43  ;;  %v943_v7 = vor.u32 %v1088_v5, %v942_v4  ;;  %v1006_v8 = vld [vmem:[%s1310_s23 + $0x1b0] sm:$0xf]  ;;  %v1104_v9 = vld [vmem:[%s1310_s23 + $0x1b4] sm:$0xf0]  ;;  %v870_v13 = vld [vmem:[%s1310_s23 + $0xa0] sm:$0xf]  ;;  %v807_v14 = vor.u32 %v1054_v12, %v806_v11 }
  0x36   : > { %641 = vmatpush.bf16.msra.mxu3 %v1023_v46  ;;  %v1007_v10 = vor.u32 %v1104_v9, %v1006_v8  ;;  %v1070_v15 = vld [vmem:[%s1310_s23 + $0xa4] sm:$0xf0]  ;;  %v934_v16 = vld [vmem:[%s1310_s23 + $0x120] sm:$0xf]  ;;  %v798_v23 = vld [vmem:[%s1310_s23 + $0x10] sm:$0xf] }
  0x37   : > { %603 = vmatpush.bf16.msra.mxu0 %v823_v50  ;;  %v1086_v17 = vld [vmem:[%s1310_s23 + $0x124] sm:$0xf0]  ;;  %v871_v18 = vor.u32 %v1070_v15, %v870_v13  ;;  %v998_v20 = vld [vmem:[%s1310_s23 + $0x1a0] sm:$0xf]  ;;  %v1052_v24 = vld [vmem:[%s1310_s23 + $0x14] sm:$0xf0] }
  0x38   : > { %616 = vmatpush.bf16.msra.mxu1 %v887_v54  ;;  %v935_v19 = vor.u32 %v1086_v17, %v934_v16  ;;  %v1102_v21 = vld [vmem:[%s1310_s23 + $0x1a4] sm:$0xf0]  ;;  %v862_v25 = vld [vmem:[%s1310_s23 + $0x90] sm:$0xf]  ;;  %v799_v26 = vor.u32 %v1052_v24, %v798_v23  ;;  %v1068_v27 = vld [vmem:[%s1310_s23 + $0x94] sm:$0xf0] }
  0x39   : > { %629 = vmatpush.bf16.msra.mxu2 %v951_v55  ;;  %v999_v22 = vor.u32 %v1102_v21, %v998_v20  ;;  %v926_v28 = vld [vmem:[%s1310_s23 + $0x110] sm:$0xf]  ;;  %v1084_v29 = vld [vmem:[%s1310_s23 + $0x114] sm:$0xf0]  ;;  %v863_v30 = vor.u32 %v1068_v27, %v862_v25  ;;  %v790_v34 = vld [vmem:[%s1310_s23] sm:$0xf] }
  0x3a   : > { %642 = vmatpush.bf16.msra.mxu3 %v1015_v58  ;;  %v927_v31 = vor.u32 %v1084_v29, %v926_v28  ;;  %v990_v32 = vld [vmem:[%s1310_s23 + $0x190] sm:$0xf]  ;;  %v1100_v33 = vld [vmem:[%s1310_s23 + $0x194] sm:$0xf0]  ;;  %v1050_v36 = vld [vmem:[%s1310_s23 + $0x4] sm:$0xf0] }
  0x3b   : > { %604 = vmatpush.bf16.msra.mxu0 %v815_v62  ;;  %v991_v35 = vor.u32 %v1100_v33, %v990_v32  ;;  %v854_v37 = vld [vmem:[%s1310_s23 + $0x80] sm:$0xf]  ;;  %v1066_v38 = vld [vmem:[%s1310_s23 + $0x84] sm:$0xf0]  ;;  %v791_v39 = vor.u32 %v1050_v36, %v790_v34  ;;  %v1063_v46 = vld [vmem:[%s1310_s23 + $0x74] sm:$0xf] }
  0x3c   : > { %617 = vmatpush.bf16.msra.mxu1 %v879_v6  ;;  %v855_v40 = vor.u32 %v1066_v38, %v854_v37  ;;  %v918_v41 = vld [vmem:[%s1310_s23 + $0x100] sm:$0xf]  ;;  %v1082_v42 = vld [vmem:[%s1310_s23 + $0x104] sm:$0xf0]  ;;  %v848_v47 = vld [vmem:[%s1310_s23 + $0x78] sm:$0xf0] }
  0x3d   : > { %630 = vmatpush.bf16.msra.mxu2 %v943_v7  ;;  %v982_v43 = vld [vmem:[%s1310_s23 + $0x180] sm:$0xf]  ;;  %v919_v44 = vor.u32 %v1082_v42, %v918_v41  ;;  %v1098_v45 = vld [vmem:[%s1310_s23 + $0x184] sm:$0xf0]  ;;  %v851_v49 = vor.u32 %v1063_v46, %v848_v47  ;;  %v1079_v50 = vld [vmem:[%s1310_s23 + $0xf4] sm:$0xf] }
  0x3e   : > { %643 = vmatpush.bf16.msra.mxu3 %v1007_v10  ;;  %v983_v48 = vor.u32 %v1098_v45, %v982_v43  ;;  %v912_v51 = vld [vmem:[%s1310_s23 + $0xf8] sm:$0xf0]  ;;  %v1095_v52 = vld [vmem:[%s1310_s23 + $0x174] sm:$0xf]  ;;  %v1061_v59 = vld [vmem:[%s1310_s23 + $0x64] sm:$0xf] }
  0x3f   : > { %605 = vmatpush.bf16.msra.mxu0 %v807_v14  ;;  %v915_v53 = vor.u32 %v1079_v50, %v912_v51  ;;  %v976_v54 = vld [vmem:[%s1310_s23 + $0x178] sm:$0xf0]  ;;  %v1111_v55 = vld [vmem:[%s1310_s23 + $0x1f4] sm:$0xf]  ;;  %v840_v60 = vld [vmem:[%s1310_s23 + $0x68] sm:$0xf0] }
  0x40   : > { %618 = vmatpush.bf16.msra.mxu1 %v871_v18  ;;  %v1040_v56 = vld [vmem:[%s1310_s23 + $0x1f8] sm:$0xf0]  ;;  %v979_v57 = vor.u32 %v1095_v52, %v976_v54  ;;  %v1077_v61 = vld [vmem:[%s1310_s23 + $0xe4] sm:$0xf]  ;;  %v843_v62 = vor.u32 %v1061_v59, %v840_v60  ;;  %v904_v63 = vld [vmem:[%s1310_s23 + $0xe8] sm:$0xf0] }
  0x41   : > { %631 = vmatpush.bf16.msra.mxu2 %v935_v19  ;;  %v1043_v58 = vor.u32 %v1111_v55, %v1040_v56  ;;  %v1093_v4 = vld [vmem:[%s1310_s23 + $0x164] sm:$0xf]  ;;  %v968_v5 = vld [vmem:[%s1310_s23 + $0x168] sm:$0xf0]  ;;  %v907_v7 = vor.u32 %v1077_v61, %v904_v63  ;;  %v1059_v11 = vld [vmem:[%s1310_s23 + $0x54] sm:$0xf] }
  0x42   : > { %644 = vmatpush.bf16.msra.mxu3 %v999_v22  ;;  %v971_v8 = vor.u32 %v1093_v4, %v968_v5  ;;  %v1109_v9 = vld [vmem:[%s1310_s23 + $0x1e4] sm:$0xf]  ;;  %v1032_v10 = vld [vmem:[%s1310_s23 + $0x1e8] sm:$0xf0]  ;;  %v832_v12 = vld [vmem:[%s1310_s23 + $0x58] sm:$0xf0] }
  0x43   : > { %606 = vmatpush.bf16.msra.mxu0 %v799_v26  ;;  %v1035_v13 = vor.u32 %v1109_v9, %v1032_v10  ;;  %v1075_v14 = vld [vmem:[%s1310_s23 + $0xd4] sm:$0xf]  ;;  %v896_v15 = vld [vmem:[%s1310_s23 + $0xd8] sm:$0xf0]  ;;  %v835_v17 = vor.u32 %v1059_v11, %v832_v12  ;;  %v1057_v23 = vld [vmem:[%s1310_s23 + $0x44] sm:$0xf] }
  0x44   : > { %619 = vmatpush.bf16.msra.mxu1 %v863_v30  ;;  %v1091_v16 = vld [vmem:[%s1310_s23 + $0x154] sm:$0xf]  ;;  %v960_v18 = vld [vmem:[%s1310_s23 + $0x158] sm:$0xf0]  ;;  %v899_v21 = vor.u32 %v1075_v14, %v896_v15  ;;  %v824_v24 = vld [vmem:[%s1310_s23 + $0x48] sm:$0xf0] }
  0x45   : > { %632 = vmatpush.bf16.msra.mxu2 %v927_v31  ;;  %v1107_v19 = vld [vmem:[%s1310_s23 + $0x1d4] sm:$0xf]  ;;  %v1024_v20 = vld [vmem:[%s1310_s23 + $0x1d8] sm:$0xf0]  ;;  %v963_v22 = vor.u32 %v1091_v16, %v960_v18  ;;  %v1073_v25 = vld [vmem:[%s1310_s23 + $0xc4] sm:$0xf]  ;;  %v827_v33 = vor.u32 %v1057_v23, %v824_v24 }
  0x46   : > { %645 = vmatpush.bf16.msra.mxu3 %v991_v35  ;;  %v1027_v26 = vor.u32 %v1107_v19, %v1024_v20  ;;  %v888_v27 = vld [vmem:[%s1310_s23 + $0xc8] sm:$0xf0]  ;;  %v1089_v28 = vld [vmem:[%s1310_s23 + $0x144] sm:$0xf]  ;;  %v816_v41 = vld [vmem:[%s1310_s23 + $0x38] sm:$0xf0] }
  0x47   : > { %607 = vmatpush.bf16.msra.mxu0 %v791_v39  ;;  %v952_v29 = vld [vmem:[%s1310_s23 + $0x148] sm:$0xf0]  ;;  %v1105_v30 = vld [vmem:[%s1310_s23 + $0x1c4] sm:$0xf]  ;;  %v891_v35 = vor.u32 %v1073_v25, %v888_v27  ;;  %v1071_v43 = vld [vmem:[%s1310_s23 + $0xb4] sm:$0xf] }
  0x48   : > { %620 = vmatpush.bf16.msra.mxu1 %v855_v40  ;;  %v1016_v31 = vld [vmem:[%s1310_s23 + $0x1c8] sm:$0xf0]  ;;  %v955_v36 = vor.u32 %v1089_v28, %v952_v29  ;;  %v1055_v40 = vld [vmem:[%s1310_s23 + $0x34] sm:$0xf]  ;;  %v1008_v52 = vld [vmem:[%s1310_s23 + $0x1b8] sm:$0xf0] }
  0x49   : > { %633 = vmatpush.bf16.msra.mxu2 %v919_v44  ;;  %v1019_v37 = vor.u32 %v1105_v30, %v1016_v31  ;;  %v819_v42 = vor.u32 %v1055_v40, %v816_v41  ;;  %v880_v44 = vld [vmem:[%s1310_s23 + $0xb8] sm:$0xf0]  ;;  %v1087_v45 = vld [vmem:[%s1310_s23 + $0x134] sm:$0xf]  ;;  %v808_v54 = vld [vmem:[%s1310_s23 + $0x28] sm:$0xf0] }
  0x4a   : > { %646 = vmatpush.bf16.msra.mxu3 %v983_v48  ;;  %v883_v48 = vor.u32 %v1071_v43, %v880_v44  ;;  %v1103_v50 = vld [vmem:[%s1310_s23 + $0x1b4] sm:$0xf]  ;;  %v872_v59 = vld [vmem:[%s1310_s23 + $0xa8] sm:$0xf0]  ;;  %v1085_v60 = vld [vmem:[%s1310_s23 + $0x124] sm:$0xf] }
  0x4b   : > { %652 = vmatpush.bf16.msrb.mxu0 %v851_v49  ;;  %v944_v49 = vld [vmem:[%s1310_s23 + $0x138] sm:$0xf0]  ;;  %v1011_v56 = vor.u32 %v1103_v50, %v1008_v52  ;;  %v1101_v63 = vld [vmem:[%s1310_s23 + $0x1a4] sm:$0xf]  ;;  %v1000_v4 = vld [vmem:[%s1310_s23 + $0x1a8] sm:$0xf0] }
  0x4c   : > { %665 = vmatpush.bf16.msrb.mxu1 %v915_v53  ;;  %v947_v51 = vor.u32 %v1087_v45, %v944_v49  ;;  %v1053_v53 = vld [vmem:[%s1310_s23 + $0x24] sm:$0xf]  ;;  %v1051_v9 = vld [vmem:[%s1310_s23 + $0x14] sm:$0xf]  ;;  %v800_v10 = vld [vmem:[%s1310_s23 + $0x18] sm:$0xf0] }
  0x4d   : > { %678 = vmatpush.bf16.msrb.mxu2 %v979_v57  ;;  %v811_v57 = vor.u32 %v1053_v53, %v808_v54  ;;  %v1067_v11 = vld [vmem:[%s1310_s23 + $0x94] sm:$0xf]  ;;  %v803_v12 = vor.u32 %v1051_v9, %v800_v10  ;;  %v928_v15 = vld [vmem:[%s1310_s23 + $0x118] sm:$0xf0]  ;;  %v1049_v20 = vld [vmem:[%s1310_s23 + $0x4] sm:$0xf] }
  0x4e   : > { %691 = vmatpush.bf16.msrb.mxu3 %v1043_v58  ;;  %v1069_v58 = vld [vmem:[%s1310_s23 + $0xa4] sm:$0xf]  ;;  %v1083_v14 = vld [vmem:[%s1310_s23 + $0x114] sm:$0xf]  ;;  %v992_v19 = vld [vmem:[%s1310_s23 + $0x198] sm:$0xf0] }
  0x4f   : > { %653 = vmatpush.bf16.msrb.mxu0 %v843_v62  ;;  %v875_v61 = vor.u32 %v1069_v58, %v872_v59  ;;  %v936_v62 = vld [vmem:[%s1310_s23 + $0x128] sm:$0xf0]  ;;  %v1099_v18 = vld [vmem:[%s1310_s23 + $0x194] sm:$0xf]  ;;  %v1065_v24 = vld [vmem:[%s1310_s23 + $0x84] sm:$0xf] }
  0x50   : > { %666 = vmatpush.bf16.msrb.mxu1 %v907_v7  ;;  %v939_v7 = vor.u32 %v1085_v60, %v936_v62  ;;  %v792_v23 = vld [vmem:[%s1310_s23 + $0x8] sm:$0xf0]  ;;  %v995_v27 = vor.u32 %v1099_v18, %v992_v19  ;;  %v1081_v28 = vld [vmem:[%s1310_s23 + $0x104] sm:$0xf]  ;;  %s1518_s3 = smov (!%p163_p6, %s786_s3), 7 }
  0x51   : > { %679 = vmatpush.bf16.msrb.mxu2 %v971_v8  ;;  %v1003_v8 = vor.u32 %v1101_v63, %v1000_v4  ;;  %v856_v25 = vld [vmem:[%s1310_s23 + $0x88] sm:$0xf0]  ;;  %v795_v30 = vor.u32 %v1049_v20, %v792_v23  ;;  %v1097_v31 = vld [vmem:[%s1310_s23 + $0x184] sm:$0xf]  ;;  %s787_s4 = sshll.u32 %s1518_s3, 3 }
  0x52   : > { %692 = vmatpush.bf16.msrb.mxu3 %v1035_v13  ;;  %v864_v13 = vld [vmem:[%s1310_s23 + $0x98] sm:$0xf0]  ;;  %v920_v29 = vld [vmem:[%s1310_s23 + $0x108] sm:$0xf0]  ;;  %s166_s7 = scalar_lea.vmem %s1509_s2, %s787_s4 }
  0x53   : > { %654 = vmatpush.bf16.msrb.mxu0 %v835_v17  ;;  %v867_v17 = vor.u32 %v1067_v11, %v864_v13 }
  0x54   : > { %667 = vmatpush.bf16.msrb.mxu1 %v899_v21 }
  0x55   : > { %680 = vmatpush.bf16.msrb.mxu2 %v963_v22  ;;  %v931_v22 = vor.u32 %v1083_v14, %v928_v15 }
  0x56   : > { %693 = vmatpush.bf16.msrb.mxu3 %v1027_v26 }
  0x57   : > { %655 = vmatpush.bf16.msrb.mxu0 %v827_v33  ;;  %v859_v33 = vor.u32 %v1065_v24, %v856_v25 }
  0x58   : > { %668 = vmatpush.bf16.msrb.mxu1 %v891_v35 }
  0x59   : > { %681 = vmatpush.bf16.msrb.mxu2 %v955_v36 }
  0x5a   : > { %694 = vmatpush.bf16.msrb.mxu3 %v1019_v37 }
  0x5b   : > { %656 = vmatpush.bf16.msrb.mxu0 %v819_v42 }
  0x5c   : > { %669 = vmatpush.bf16.msrb.mxu1 %v883_v48 }
  0x5d   : > { %682 = vmatpush.bf16.msrb.mxu2 %v947_v51 }
  0x5e   : > { %695 = vmatpush.bf16.msrb.mxu3 %v1011_v56 }
  0x5f   : > { %657 = vmatpush.bf16.msrb.mxu0 %v811_v57 }
  0x60   : > { %670 = vmatpush.bf16.msrb.mxu1 %v875_v61 }
  0x61   : > { %683 = vmatpush.bf16.msrb.mxu2 %v939_v7 }
  0x62   : > { %696 = vmatpush.bf16.msrb.mxu3 %v1003_v8 }
  0x63   : > { %658 = vmatpush.bf16.msrb.mxu0 %v803_v12 }
  0x64   : > { %671 = vmatpush.bf16.msrb.mxu1 %v867_v17 }
  0x65   : > { %684 = vmatpush.bf16.msrb.mxu2 %v931_v22 }
  0x66   : > { %697 = vmatpush.bf16.msrb.mxu3 %v995_v27 }
  0x67   : > { %659 = vmatpush.bf16.msrb.mxu0 %v795_v30 }
  0x68   : > { %672 = vmatpush.bf16.msrb.mxu1 %v859_v33 }
  0xa2   : > { %v1422_v6 = vpop.xlane.xlu0 %179 }
  0xa3   : > { %1155 = vrsqrt.f32 %v1422_v6  ;;  %vm188_vm0 = vcmp.eq.f32.partialorder %v1422_v6, inf  ;;  %vm190_vm1 = vcmp.eq.f32.partialorder %v1422_v6, 0.0  ;;  %v191_v47 = vand.u32 2147483648, %v1422_v6 }
  0xa9   : > { %v1156_v32 = vpop.eup %1155 }
  0xaa   : > { %v182_v34 = vmul.f32 %v1156_v32, %v1422_v6 }
  0xac   : > { %v183_v38 = vmul.f32 %v1156_v32, %v182_v34 }
  0xae   : > { %v184_v39 = vmul.f32 0.5, %v183_v38 }
  0xb0   : > { %v185_v46 = vsub.f32 1.5, %v184_v39 }
  0xb2   : > { %v186_v55 = vmul.f32 %v1156_v32, %v185_v46  ;;  %v984_v32 = vld [vmem:[%s1310_s23 + $0x188] sm:$0xf0] }
  0xb3   : > { %v987_v34 = vor.u32 %v1097_v31, %v984_v32 }
  0xb4   : > { %v187_v5 = vmul.f32 %v186_v55, %v1422_v6 }
  0xb5   : > { %698 = vmatpush.bf16.msrb.mxu3 %v987_v34 }
  0xb6   : > { %v189_v16 = vsel %vm188_vm0, %v1422_v6, %v187_v5  ;;  %v923_v6 = vor.u32 %v1081_v28, %v920_v29 }
  0xb7   : > { %v192_v21 = vsel %vm190_vm1, %v191_v47, %v189_v16 }
  0xb8   : > { %v193_v26 = vmax.f32 %v192_v21, 1e-12  ;;  %685 = vmatpush.bf16.msrb.mxu2 %v923_v6 }
  0xba   : > { %1157 = vrcp.f32 %v193_v26  ;;  %v205_v38 = vand.u32 2147483648, %v193_v26  ;;  %v203_v40 = vand.u32 2147483647, %v193_v26  ;;  %vm199_vm3 = vweird.f32 %v193_v26 }
  0xbc   : > { %v206_v42 = vor.u32 1.1754944e-38, %v205_v38  ;;  %vm204_vm5 = vcmp.eq.f32.partialorder %v203_v40, 8.507059e+37 }
  0xc0   : > { %v1158_v35 = vpop.eup %1157 }
  0xc1   : > { %v195_v36 = vmul.f32 %v1158_v35, %v193_v26  ;;  %vm200_vm2 = vweird.f32 %v1158_v35 }
  0xc2   : > { %vm201_vm4 = vmor %vm199_vm3, %vm200_vm2 }
  0xc3   : > { %v196_v37 = vsub.f32 1.0, %v195_v36 }
  0xc5   : > { %v197_v39 = vmul.f32 %v1158_v35, %v196_v37 }
  0xc7   : > { %v198_v41 = vadd.f32 %v1158_v35, %v197_v39 }
  0xc9   : > { %v202_v43 = vsel %vm201_vm4, %v1158_v35, %v198_v41 }
  0xca   : > { %v207_v44 = vsel %vm204_vm5, %v206_v42, %v202_v43 }
  0xcb   : > { %v208_v45 = vmul.f32 %v207_v44, %v1319_v0  ;;  %v209_v46 = vmul.f32 %v207_v44, %v1324_v1  ;;  %v210_v47 = vmul.f32 %v207_v44, %v1329_v2  ;;  %v211_v48 = vmul.f32 %v207_v44, %v1334_v3 }
  0xcd   : > { %v212_v49 = vpack.c.bf16 %v208_v45, %v208_v45  ;;  %v213_v50 = vpack.c.bf16 %v209_v46, %v209_v46  ;;  %v214_v51 = vpack.c.bf16 %v210_v47, %v210_v47  ;;  %v215_v52 = vpack.c.bf16 %v211_v48, %v211_v48 }
  0xcf   : > { %608 = vmatmul.bf16.vlgmr.msra.gmra.mxu0 %v212_v49  ;;  %621 = vmatmul.bf16.vlgmr.msra.gmra.mxu1 %v213_v50 }
  0xd0   : > { %634 = vmatmul.bf16.vlgmr.msra.gmra.mxu2 %v214_v51  ;;  %647 = vmatmul.bf16.vlgmr.msra.gmra.mxu3 %v215_v52 }
  0xdf   : > { %660 = vmatmul.bf16.vlgmr.msrb.gmra.mxu0 %v212_v49  ;;  %673 = vmatmul.bf16.vlgmr.msrb.gmra.mxu1 %v213_v50 }
  0xe0   : > { %686 = vmatmul.bf16.vlgmr.msrb.gmra.mxu2 %v214_v51  ;;  %699 = vmatmul.bf16.vlgmr.msrb.gmra.mxu3 %v215_v52 }
 0x14c   : > { %v609_v0 = vpop.f32.mrf.mxu0  ;;  %v622_v1 = vpop.f32.mrf.mxu1 }
 0x14d   : > { %v623_v2 = vadd.f32 %v622_v1, %v609_v0 }
 0x153   : > { %v635_v3 = vpop.f32.mrf.mxu2  ;;  %v648_v53 = vpop.f32.mrf.mxu3 }
 0x154   : > { %v636_v54 = vadd.f32 %v635_v3, %v623_v2  ;;  %v611_v55 = vpop.f32.mrf.mxu0  ;;  %v624_v56 = vpop.f32.mrf.mxu1 }
 0x156   : > { %v649_v57 = vadd.f32 %v648_v53, %v636_v54 }
 0x158   : > { %v1044_v58 = vclamps-f32 %v649_v57, 1.0 }
 0x15a   : > { %708 = vst [vmem:[%s166_s7] sm:$0xff] %v1044_v58 }
 0x15b   : > { %v637_v59 = vpop.f32.mrf.mxu2  ;;  %v650_v60 = vpop.f32.mrf.mxu3 }
 0x15c   : > { %v661_v61 = vpop.f32.mrf.mxu0  ;;  %v674_v62 = vpop.f32.mrf.mxu1 }
 0x15d   : > { %v675_v63 = vadd.f32 %v674_v62, %v661_v61 }
 0x163   : > { %v687_v4 = vpop.f32.mrf.mxu2  ;;  %v700_v5 = vpop.f32.mrf.mxu3 }
 0x164   : > { %v688_v7 = vadd.f32 %v687_v4, %v675_v63  ;;  %v663_v8 = vpop.f32.mrf.mxu0  ;;  %v676_v9 = vpop.f32.mrf.mxu1 }
 0x166   : > { %v701_v10 = vadd.f32 %v700_v5, %v688_v7 }
 0x168   : > { %v1045_v11 = vclamps-f32 %v701_v10, 1.0 }
 0x16a   : > { %709 = vst [vmem:[%s166_s7 + $0x8] sm:$0xff] %v1045_v11 }
 0x16b   : > { %v689_v12 = vpop.f32.mrf.mxu2  ;;  %v702_v13 = vpop.f32.mrf.mxu3 }
 0x16c PF: > { %p12_p7 = scmp.ge.s32.totalorder %s1263_s14, 6   ;;  %s1513_s9 = smov %s1215_s10 }
 0x16d   : > { %s1514_s10 = smov %s1219_s11  ;;  %s1515_s11 = smov %s1273_s17 }
 0x16e   : > { %s1516_s12 = smov %s1263_s14  ;;  %14 = sbr.rel (!%p12_p7) target bundleno = 3 (0x3), region = 68 }
 0x173   :  { %732 = vsyncpa [#allocation3], 1 }
 0x174   :  { %734 = vsyncpa [#allocation3 + $0x1], 1 }

</bundles_post_ra>
